<compile_context>
chip_gen: v5e
topology: v5e:2x2
jax: 0.10.0
libtpu: 0.0.40
codegen_flags: <defaults>
</compile_context>

<pallas_src>
import jax
import jax.numpy as jnp
from jax import lax
from jax.experimental import pallas as pl
from jax.experimental.pallas import tpu as pltpu


_LANE = 128
_SUBLANE = 8
_MAX_BATCH_TILE = 512     # beyond this, per-step overhead is already negligible


def _round_up(x, m):
    return ((x + m - 1) // m) * m


def _vmem_limits():
    """(tile-sizing budget, vmem_limit_bytes) derived from the physical VMEM
    of the current TPU generation (128 MiB v5e/v6e, 64 MiB v7x)."""
    try:
        phys = int(pltpu.get_tpu_info().vmem_capacity_bytes)
    except Exception:
        phys = 64 * 1024 * 1024            # conservative fallback (v7x-sized)
    limit = min(int(phys * 0.85), phys - 8 * 1024 * 1024)
    budget = int(limit * 0.85)             # headroom for compiler-internal scratch
    return budget, limit


def classifier_kernel(x_ref, w1_ref, b1_ref, w2_ref, b2_ref, o_ref):
    # x_ref : (TB, C, HW)        w1_ref: (C, HID_PAD)   b1_ref: (1, HID_PAD)
    # w2_ref: (HID_PAD, N_PAD)   b2_ref: (1, N_PAD)     o_ref : (TB, N_PAD)
    pooled = jnp.mean(x_ref[...], axis=-1)                 # global avg pool -> (TB, C)
    # K is now C (not C*HW), so even 6-pass HIGHEST f32 matmuls are far below
    # the HBM roofline on every generation; keep exact f32 accumulation.
    h = jnp.dot(pooled, w1_ref[...],
                preferred_element_type=jnp.float32,
                precision=lax.Precision.HIGHEST)
    h = jnp.maximum(h + b1_ref[...], 0.0)                  # bias + relu (full-lane)
    out = jnp.dot(h, w2_ref[...],
                  preferred_element_type=jnp.float32,
                  precision=lax.Precision.HIGHEST) + b2_ref[...]
    o_ref[...] = out.astype(o_ref.dtype)


def prepare_params(w1, b1, w2, b2, C):
    """One-time weight prep (cache / hoist out of the hot path in a real model):
    slice the active input features (w1[:, :C], elastic width), transpose both
    weights, zero-pad the hidden width to 128 lanes and the output width to a
    multiple of 128 lanes (lane-dense, unmasked stores)."""
    hid = w1.shape[0]                                      # 64 in the module
    out_n = w2.shape[0]
    hid_pad = _round_up(max(hid, _LANE), _LANE)
    n_pad = _round_up(max(out_n, _LANE), _LANE)

    w1_p = jnp.zeros((C, hid_pad), jnp.float32).at[:, :hid].set(
        jnp.transpose(w1[:, :C]).astype(jnp.float32))
    b1_p = jnp.zeros((1, hid_pad), jnp.float32).at[:, :hid].set(
        b1.reshape(1, hid).astype(jnp.float32))
    w2_p = jnp.zeros((hid_pad, n_pad), jnp.float32).at[:hid, :out_n].set(
        jnp.transpose(w2).astype(jnp.float32))
    b2_p = jnp.zeros((1, n_pad), jnp.float32).at[:, :out_n].set(
        b2.reshape(1, out_n).astype(jnp.float32))
    return w1_p, b1_p, w2_p, b2_p, out_n


def _pick_batch_tile(B, C, HW, hid_pad, n_pad, budget):
    """Largest batch tile under the VMEM budget (x/out double-buffered,
    weights resident), multiple of 8; at least 2 grid blocks whenever B > 8 so
    the 'parallel' batch axis can shard across v7x's two TensorCores."""
    if B <= _SUBLANE:
        return B                                           # single tile == full array
    row_x = _round_up(C, _SUBLANE) * _round_up(HW, _LANE) * 4   # VMEM layout bytes/row
    row_o = n_pad * 4
    w_bytes = 2 * 4 * (C * hid_pad + hid_pad + hid_pad * n_pad + n_pad)
    tb = (budget - w_bytes) // (2 * (row_x + row_o))
    tb = max(_SUBLANE, (int(tb) // _SUBLANE) * _SUBLANE)
    tb = min(tb, _MAX_BATCH_TILE)
    tb = min(tb, _round_up(pl.cdiv(B, 2), _SUBLANE))       # >= 2 blocks (v7x megacore)
    return int(tb)


def classifier_forward(x, w1, b1, w2, b2):
    """x: (B, C, H, W) float32.  w1: (64, flatten_input), b1: (64,),
    w2: (output_n, 64), b2: (output_n,).  Matches Classifier.forward (eval)."""
    B, C, H, W = x.shape
    assert H == W, "avg_pool2d(x, x.size(-1)) global-pool semantics assume H == W"
    assert C <= w1.shape[1], "more channels than linear_1 in_features"
    HW = H * W

    w1_p, b1_p, w2_p, b2_p, out_n = prepare_params(w1, b1, w2, b2, C)
    hid_pad, n_pad = w2_p.shape

    # Free reshape of contiguous NCHW -> (B, C, HW); no padded-batch HBM copy.
    x3 = x.reshape(B, C, HW).astype(jnp.float32)

    budget, vmem_limit = _vmem_limits()
    tb = _pick_batch_tile(B, C, HW, hid_pad, n_pad, budget)
    grid = (pl.cdiv(B, tb),)

    cost = pl.CostEstimate(
        flops=2 * B * (C * hid_pad + hid_pad * n_pad) + B * C * HW,
        transcendentals=0,
        bytes_accessed=4 * (B * C * HW + C * hid_pad + hid_pad * n_pad + B * n_pad),
    )

    out = pl.pallas_call(
        classifier_kernel,
        out_shape=jax.ShapeDtypeStruct((B, n_pad), jnp.float32),
        grid_spec=pltpu.PrefetchScalarGridSpec(
            num_scalar_prefetch=0,
            grid=grid,
            in_specs=[
                pl.BlockSpec((tb, C, HW), lambda i: (i, 0, 0)),      # x tile (streamed)
                pl.BlockSpec((C, hid_pad), lambda i: (0, 0)),        # w1 (resident)
                pl.BlockSpec((1, hid_pad), lambda i: (0, 0)),        # b1 (resident)
                pl.BlockSpec((hid_pad, n_pad), lambda i: (0, 0)),    # w2 (resident)
                pl.BlockSpec((1, n_pad), lambda i: (0, 0)),          # b2 (resident)
            ],
            out_specs=pl.BlockSpec((tb, n_pad), lambda i: (i, 0)),
        ),
        compiler_params=pltpu.CompilerParams(
            dimension_semantics=("parallel",),
            vmem_limit_bytes=vmem_limit,
        ),
        cost_estimate=cost,
    )(x3, w1_p, b1_p, w2_p, b2_p)

    return out[:, :out_n]


def init_params(key, flatten_input, output_n):
    """Deterministic synthetic params matching nn.Linear shapes."""
    k1, k2, k3, k4 = jax.random.split(key, 4)
    lim1 = 1.0 / (flatten_input ** 0.5)
    lim2 = 1.0 / (64.0 ** 0.5)
    w1 = jax.random.uniform(k1, (64, flatten_input), jnp.float32, -lim1, lim1)
    b1 = jax.random.uniform(k2, (64,), jnp.float32, -lim1, lim1)
    w2 = jax.random.uniform(k3, (output_n, 64), jnp.float32, -lim2, lim2)
    b2 = jax.random.uniform(k4, (output_n,), jnp.float32, -lim2, lim2)
    return w1, b1, w2, b2


def reference_forward(x, w1, b1, w2, b2):
    """Pure-JAX reference of the PyTorch forward (f32 precision)."""
    B, C, H, W = x.shape
    pooled = jnp.mean(x, axis=(2, 3))                              # (B, C)
    h = jnp.dot(pooled, jnp.transpose(w1[:, :C]),
                precision=lax.Precision.HIGHEST) + b1
    h = jnp.maximum(h, 0.0)
    return jnp.dot(h, jnp.transpose(w2),
                   precision=lax.Precision.HIGHEST) + b2


if __name__ == "__main__":
    key = jax.random.PRNGKey(0)
    kx, kp = jax.random.split(key)

    B, C, H, W = 2, 4, 16, 16
    flatten_input = 4          # channel count fed to the classifier
    output_n = 10

    x = jax.random.normal(kx, (B, C, H, W), jnp.float32)
    w1, b1, w2, b2 = init_params(kp, flatten_input, output_n)

    out = classifier_forward(x, w1, b1, w2, b2)
    out = jax.block_until_ready(out)

    ref = reference_forward(x, w1, b1, w2, b2)
    assert out.shape == (B, output_n)
    assert jnp.allclose(out, ref, atol=1e-5, rtol=1e-5), "mismatch vs reference"

    print("KERNEL_OK")
</pallas_src>

<mosaic_0001>
module attributes {stable_mosaic.version = 11 : i64} {
  func.func @classifier_kernel(%arg0: i32, %arg1: memref<2x4x256xf32, #tpu.memory_space<vmem>>, %arg2: memref<4x128xf32, #tpu.memory_space<vmem>>, %arg3: memref<1x128xf32, #tpu.memory_space<vmem>>, %arg4: memref<128x128xf32, #tpu.memory_space<vmem>>, %arg5: memref<1x128xf32, #tpu.memory_space<vmem>>, %arg6: memref<2x128xf32, #tpu.memory_space<vmem>>) attributes {dimension_semantics = [#tpu.dimension_semantics<parallel>], iteration_bounds = array<i64: 1>, scalar_prefetch = 0 : i64, scratch_operands = 0 : i64, tpu.core_type = #tpu.core_type<tc>, window_params = [{transform_indices = @transform_0, window_bounds = array<i64: 2, 4, 256>}, {pipeline_mode = #tpu.pipeline_mode<synchronous>, transform_indices = @transform_1, window_bounds = array<i64: 4, 128>}, {pipeline_mode = #tpu.pipeline_mode<synchronous>, transform_indices = @transform_2, window_bounds = array<i64: 1, 128>}, {pipeline_mode = #tpu.pipeline_mode<synchronous>, transform_indices = @transform_3, window_bounds = array<i64: 128, 128>}, {pipeline_mode = #tpu.pipeline_mode<synchronous>, transform_indices = @transform_4, window_bounds = array<i64: 1, 128>}, {transform_indices = @transform_5, window_bounds = array<i64: 2, 128>}]} {
    %c0 = arith.constant 0 : index
    %c0_0 = arith.constant 0 : index
    %c0_1 = arith.constant 0 : index
    %0 = vector.load %arg1[%c0, %c0_0, %c0_1] : memref<2x4x256xf32, #tpu.memory_space<vmem>>, vector<2x4x256xf32>
    %cst = arith.constant dense<0.000000e+00> : vector<2x4xf32>
    %1 = vector.multi_reduction <add>, %0, %cst [2] : vector<2x4x256xf32> to vector<2x4xf32>
    %cst_2 = arith.constant 2.560000e+02 : f32
    %2 = vector.broadcast %cst_2 : f32 to vector<2x4xf32>
    %3 = arith.divf %1, %2 : vector<2x4xf32>
    %c0_3 = arith.constant 0 : index
    %c0_4 = arith.constant 0 : index
    %4 = vector.load %arg2[%c0_3, %c0_4] : memref<4x128xf32, #tpu.memory_space<vmem>>, vector<4x128xf32>
    %cst_5 = arith.constant dense<0.000000e+00> : vector<2x128xf32>
    %5 = tpu.matmul %3, %4, %cst_5 {dimension_numbers = #tpu.dot_dimension_numbers<[1], [0], [0], [1], [0, 0, 1, 1], [], []>, precision = #tpu.contract_precision<fp32>} : vector<2x4xf32>, vector<4x128xf32>, vector<2x128xf32> -> vector<2x128xf32>
    %c0_6 = arith.constant 0 : index
    %c0_7 = arith.constant 0 : index
    %6 = vector.load %arg3[%c0_6, %c0_7] : memref<1x128xf32, #tpu.memory_space<vmem>>, vector<1x128xf32>
    %7 = vector.broadcast %6 : vector<1x128xf32> to vector<2x128xf32>
    %8 = arith.addf %5, %7 : vector<2x128xf32>
    %cst_8 = arith.constant 0.000000e+00 : f32
    %9 = vector.broadcast %cst_8 : f32 to vector<2x128xf32>
    %10 = arith.maximumf %8, %9 : vector<2x128xf32>
    %c0_9 = arith.constant 0 : index
    %c0_10 = arith.constant 0 : index
    %11 = vector.load %arg4[%c0_9, %c0_10] : memref<128x128xf32, #tpu.memory_space<vmem>>, vector<128x128xf32>
    %cst_11 = arith.constant dense<0.000000e+00> : vector<2x128xf32>
    %12 = tpu.matmul %10, %11, %cst_11 {dimension_numbers = #tpu.dot_dimension_numbers<[1], [0], [0], [1], [0, 0, 1, 1], [], []>, precision = #tpu.contract_precision<fp32>} : vector<2x128xf32>, vector<128x128xf32>, vector<2x128xf32> -> vector<2x128xf32>
    %c0_12 = arith.constant 0 : index
    %c0_13 = arith.constant 0 : index
    %13 = vector.load %arg5[%c0_12, %c0_13] : memref<1x128xf32, #tpu.memory_space<vmem>>, vector<1x128xf32>
    %14 = vector.broadcast %13 : vector<1x128xf32> to vector<2x128xf32>
    %15 = arith.addf %12, %14 : vector<2x128xf32>
    %c0_14 = arith.constant 0 : index
    %c0_15 = arith.constant 0 : index
    %16 = vector.load %arg6[%c0_14, %c0_15] : memref<2x128xf32, #tpu.memory_space<vmem>>, vector<2x128xf32>
    tpu.vector_store %arg6[%c0_14, %c0_15], %15 {strides = array<i32>} : memref<2x128xf32, #tpu.memory_space<vmem>>, vector<2x128xf32>,
    return
  }
  func.func @transform_0(%arg0: i32) -> (i32, i32, i32) {
    %c0_i32 = arith.constant 0 : i32
    %c0_i32_0 = arith.constant 0 : i32
    %c0_i32_1 = arith.constant 0 : i32
    return %arg0, %c0_i32, %c0_i32_0 : i32, i32, i32
  }
  func.func @transform_1(%arg0: i32) -> (i32, i32) {
    %c0_i32 = arith.constant 0 : i32
    %c0_i32_0 = arith.constant 0 : i32
    %c0_i32_1 = arith.constant 0 : i32
    return %c0_i32, %c0_i32_0 : i32, i32
  }
  func.func @transform_2(%arg0: i32) -> (i32, i32) {
    %c0_i32 = arith.constant 0 : i32
    %c0_i32_0 = arith.constant 0 : i32
    %c0_i32_1 = arith.constant 0 : i32
    return %c0_i32, %c0_i32_0 : i32, i32
  }
  func.func @transform_3(%arg0: i32) -> (i32, i32) {
    %c0_i32 = arith.constant 0 : i32
    %c0_i32_0 = arith.constant 0 : i32
    %c0_i32_1 = arith.constant 0 : i32
    return %c0_i32, %c0_i32_0 : i32, i32
  }
  func.func @transform_4(%arg0: i32) -> (i32, i32) {
    %c0_i32 = arith.constant 0 : i32
    %c0_i32_0 = arith.constant 0 : i32
    %c0_i32_1 = arith.constant 0 : i32
    return %c0_i32, %c0_i32_0 : i32, i32
  }
  func.func @transform_5(%arg0: i32) -> (i32, i32) {
    %c0_i32 = arith.constant 0 : i32
    %c0_i32_0 = arith.constant 0 : i32
    return %arg0, %c0_i32 : i32, i32
  }
}

</mosaic_0001>

<bundles_post_ra>
// kernel: tpu_custom_call.1
= control target key start
LH: loop header
LB: loop body
LE: loop exit
PB: predicated region body
PF: predicated region fallthrough
CT: control target
= control target key end

     0   :  { %10 = vsyncpa [#allocation3], 0  ;;  %s1026_s0 = inlined_call_operand.hbm [shape: f32[2,4,256], index: 0, kind: input, shape index: {}]   ;;  %s1027_s1 = inlined_call_operand.hbm [shape: f32[4,128], index: 1, kind: input, shape index: {}]   ;;  %s1028_s2 = inlined_call_operand.vmem [shape: f32[1,128], index: 2, kind: input, shape index: {}]   ;;  %s1029_s3 = inlined_call_operand.hbm [shape: f32[128,128], index: 3, kind: input, shape index: {}]   ;;  %s1030_s4 = inlined_call_operand.vmem [shape: f32[1,128], index: 4, kind: input, shape index: {}]   ;;  %s1031_s5 = inlined_call_operand.hbm [shape: f32[2,128], index: 5, kind: output, shape index: {}]  }
   0x1   :  { %11 = vsyncpa [#allocation6], 0  ;;  %s31_s20 = sshll.u32 %s1027_s1, 4  ;;  %s32_s20 = int_to_ptr.hbm [resolvable:$true] %s31_s20 }
   0x2   :  { %12 = vsyncpa [#allocation4], 0  ;;  %s760_s21 = smov [#allocation5]   ;;  %s17_s25 = sshll.u32 %s1026_s0, 4  ;;  %s18_s25 = int_to_ptr.hbm [resolvable:$true] %s17_s25 }
   0x3   :  { %s33_s22 = sshll.u32 %s760_s21, 4  ;;  %s761_s26 = smov [#allocation2]   ;;  %s34_s22 = int_to_ptr.vmem [resolvable:$true] %s33_s22 }
   0x4   :  { %36 = dma.hbm_to_vmem [thread:$0]  %s32_s20, 64, %s34_s22, [#allocation6]  }
   0x5   :  { %s19_s27 = sshll.u32 %s761_s26, 4  ;;  %s762_s28 = smov 128   ;;  %s20_s27 = int_to_ptr.vmem [resolvable:$true] %s19_s27 }
   0x6   :  { %s763_s29 = smov 8   ;;  %s43_s1 = sshll.u32 %s1029_s3, 4  ;;  %s44_s1 = int_to_ptr.hbm [resolvable:$true] %s43_s1 }
   0x7   :  { %25 = dma.hbm_to_vmem [thread:$0]  %s18_s25, 256, %s20_s27, [#allocation3], %s762_s28, %s762_s28, %s763_s29  }
   0x8   :  { %s764_s7 = smov [#allocation7]  }
   0x9   :  { %s45_s8 = sshll.u32 %s764_s7, 4  ;;  %s46_s8 = int_to_ptr.vmem [resolvable:$true] %s45_s8 }
   0xa   :  { %51 = dma.hbm_to_vmem [thread:$0]  %s44_s1, 2048, %s46_s8, [#allocation6], %s762_s28, %s762_s28, %s763_s29  }
   0xb   :  { %754 = dma.done.wait [#allocation3], 256  }
   0xc   :  { %755 = vsyncadd [#allocation3], 4294967040 }
   0xd   :  { %756 = dma.done.wait [#allocation6], 2112  }
   0xe   :  { %757 = vsyncadd [#allocation6], 4294965184  ;;  %v66_v0 = vld [vmem:[#allocation2] sm:$0xff]  ;;  %v67_v1 = vld [vmem:[#allocation2 + $0x8] sm:$0xff]  ;;  %vm81_vm0 = vcmask 1043456   ;;  %v765_v16 = vmov 256.0   ;;  %v108_v26 = vlaneseq }
   0xf   :  { %70 = vst [vmem:[#allocation1] ss:$2 sm:$0xff] %v66_v0  ;;  %v101_v12 = vld [vmem:[#allocation5] sm:$0xf]  ;;  %656 = vrcp.f32 %v765_v16  ;;  %vm112_vm2 = vcmask 1041409   ;;  %vm114_vm3 = vcmask 31744  }
  0x10   :  { %74 = vst [vmem:[#allocation1 + $0x10] ss:$2 sm:$0xff] %v67_v1  ;;  %v118_v13 = vsel %vm81_vm0, %v101_v12, 0  ;;  %v109_v28 = vand.u32 127, %v108_v26  ;;  %v282_v32 = vld [vmem:[#allocation7 + $0x78] sm:$0xff]  ;;  %v281_v33 = vld [vmem:[#allocation7 + $0x70] sm:$0xff] }
  0x11   :  { %v806_v14 = vand.u32 4294901760, %v118_v13  ;;  %v280_v34 = vld [vmem:[#allocation7 + $0x68] sm:$0xff]  ;;  %v818_v36 = vand.u32 4294901760, %v282_v32  ;;  %v820_v37 = vand.u32 4294901760, %v281_v33  ;;  %v279_v39 = vld [vmem:[#allocation7 + $0x60] sm:$0xff]  ;;  %v278_v40 = vld [vmem:[#allocation7 + $0x58] sm:$0xff] }
  0x12   :  { %v822_v38 = vand.u32 4294901760, %v280_v34  ;;  %v277_v41 = vld [vmem:[#allocation7 + $0x50] sm:$0xff]  ;;  %v824_v43 = vand.u32 4294901760, %v279_v39  ;;  %v826_v44 = vand.u32 4294901760, %v278_v40  ;;  %v276_v46 = vld [vmem:[#allocation7 + $0x48] sm:$0xff]  ;;  %s766_s10 = smov [#allocation8]  }
  0x13   :  { %v809_v15 = vsub.f32 %v118_v13, %v806_v14  ;;  %136 = vmatpush.msra.mxu0 %v806_v14  ;;  %v828_v45 = vand.u32 4294901760, %v277_v41  ;;  %v831_v47 = vsub.f32 %v282_v32, %v818_v36  ;;  %v834_v48 = vsub.f32 %v281_v33, %v820_v37  ;;  %288 = vmatpush.msra.mxu2 %v818_v36  ;;  %s634_s11 = sshll.u32 %s766_s10, 4  ;;  %s636_s14 = sshll.u32 %s1031_s5, 4  ;;  %s635_s11 = int_to_ptr.vmem [resolvable:$true] %s634_s11  ;;  %s637_s14 = int_to_ptr.hbm [resolvable:$true] %s636_s14 }
  0x14   :  { %v837_v49 = vsub.f32 %v280_v34, %v822_v38  ;;  %v840_v50 = vand.u32 4294901760, %v276_v46  ;;  %v844_v52 = vsub.f32 %v279_v39, %v824_v43  ;;  %v847_v53 = vsub.f32 %v278_v40, %v826_v44 }
  0x15   :  { %v163_v17 = vand.u32 4294901760, %v809_v15  ;;  %189 = vmatpush.msrb.mxu0 %v809_v15  ;;  %v657_v20 = vpop.eup %656  ;;  %v850_v54 = vsub.f32 %v277_v41, %v828_v45  ;;  %v330_v56 = vand.u32 4294901760, %v831_v47  ;;  %v336_v57 = vand.u32 4294901760, %v834_v48  ;;  %290 = vmatpush.msra.mxu2 %v820_v37 }
  0x16   :  { %v71_v2 = vld.sshfl [vmem:[#allocation1] sm:$0xff pattern:$0x75316420]  ;;  %v72_v3 = vld.sshfl [vmem:[#allocation1 + $0x8] sm:$0xff pattern:$0x75316420]  ;;  %vm97_vm1 = vweird.f32 %v657_v20  ;;  %v872_v1 = vsub.f32 %v276_v46, %v840_v50 }
  0x17   :  { %v82_v4 = vsel %vm81_vm0, %v71_v2, 0.0  ;;  %v83_v5 = vsel %vm81_vm0, %v72_v3, 0.0  ;;  %v75_v7 = vld.sshfl [vmem:[#allocation1 + $0x10] sm:$0xff pattern:$0x75316420]  ;;  %v164_v18 = vsub.f32 %v809_v15, %v163_v17  ;;  %v93_v21 = vmul.f32 256.0, %v657_v20  ;;  %292 = vmatpush.msra.mxu2 %v822_v38 }
  0x18   :  { %v84_v6 = vadd.f32 %v83_v5, %v82_v4  ;;  %v76_v8 = vld.sshfl [vmem:[#allocation1 + $0x18] sm:$0xff pattern:$0x75316420]  ;;  %v87_v9 = vsel %vm81_vm0, %v75_v7, 0.0  ;;  %v342_v58 = vand.u32 4294901760, %v837_v49  ;;  %v348_v60 = vand.u32 4294901760, %v844_v52 }
  0x19   :  { %v88_v10 = vsel %vm81_vm0, %v76_v8, 0.0  ;;  %v165_v19 = vand.u32 4294901760, %v164_v18  ;;  %v94_v22 = vsub.f32 1.0, %v93_v21  ;;  %v354_v61 = vand.u32 4294901760, %v847_v53  ;;  %v275_v4 = vld [vmem:[#allocation7 + $0x40] sm:$0xff]  ;;  %v274_v5 = vld [vmem:[#allocation7 + $0x38] sm:$0xff]  ;;  %294 = vmatpush.msra.mxu2 %v824_v43 }
  0x1a   :  { %85 = vadd.xlane.f32.xlu0 %v84_v6  ;;  %v89_v11 = vadd.f32 %v88_v10, %v87_v9  ;;  %v331_v62 = vsub.f32 %v831_v47, %v330_v56  ;;  %v337_v63 = vsub.f32 %v834_v48, %v336_v57  ;;  %v343_v0 = vsub.f32 %v837_v49, %v342_v58  ;;  %v273_v6 = vld [vmem:[#allocation7 + $0x30] sm:$0xff]  ;;  %v272_v10 = vld [vmem:[#allocation7 + $0x28] sm:$0xff] }
  0x1b   :  { %166 = vmatpush.msra.mxu1 %v165_v19  ;;  %v95_v23 = vmul.f32 %v657_v20, %v94_v22  ;;  %v360_v3 = vand.u32 4294901760, %v850_v54  ;;  %v349_v9 = vsub.f32 %v844_v52, %v348_v60  ;;  %v355_v13 = vsub.f32 %v847_v53, %v354_v61  ;;  %296 = vmatpush.msra.mxu2 %v826_v44 }
  0x1c   :  { %v332_v7 = vand.u32 4294901760, %v331_v62  ;;  %v338_v8 = vand.u32 4294901760, %v337_v63  ;;  %v344_v12 = vand.u32 4294901760, %v343_v0  ;;  %v366_v16 = vand.u32 4294901760, %v872_v1  ;;  %v270_v63 = vld [vmem:[#allocation7 + $0x18] sm:$0xff] }
  0x1d   :  { %212 = vmatpush.msrb.mxu1 %v806_v14  ;;  %v96_v24 = vadd.f32 %v657_v20, %v95_v23  ;;  %v886_v18 = vand.u32 4294901760, %v275_v4  ;;  %v891_v19 = vand.u32 4294901760, %v273_v6  ;;  %v361_v21 = vsub.f32 %v850_v54, %v360_v3  ;;  %298 = vmatpush.msra.mxu2 %v828_v45 }
  0x1e   :  { %333 = vmatpush.msra.mxu3 %v332_v7  ;;  %v896_v22 = vand.u32 4294901760, %v272_v10  ;;  %v350_v23 = vand.u32 4294901760, %v349_v9 }
  0x1f   :  { %v98_v27 = vsel %vm97_vm1, %v657_v20, %v96_v24  ;;  %v899_v24 = vsub.f32 %v275_v4, %v886_v18  ;;  %v906_v26 = vsub.f32 %v273_v6, %v891_v19  ;;  %300 = vmatpush.msra.mxu2 %v840_v50  ;;  %v362_v33 = vand.u32 4294901760, %v361_v21  ;;  %v269_v4 = vld [vmem:[#allocation7 + $0x10] sm:$0xff] }
  0x20   :  { %339 = vmatpush.msra.mxu3 %v338_v8  ;;  %v915_v32 = vsub.f32 %v272_v10, %v896_v22  ;;  %v972_v7 = vand.u32 4294901760, %v269_v4  ;;  %v268_v8 = vld [vmem:[#allocation7 + $0x8] sm:$0xff] }
  0x21   :  { %302 = vmatpush.msra.mxu2 %v886_v18 }
  0x22   :  { %90 = vadd.xlane.f32.xlu0 %v89_v11  ;;  %345 = vmatpush.msra.mxu3 %v344_v12  ;;  %v390_v15 = vand.u32 4294901760, %v915_v32  ;;  %v315_v12 = vand.u32 4294901760, %v268_v8 }
  0x24   :  { %351 = vmatpush.msra.mxu3 %v350_v23  ;;  %v391_v46 = vsub.f32 %v915_v32, %v390_v15 }
  0x8d   :  { %v86_v25 = vpop.xlane.xlu0 %85 }
  0x8e   :  { %v99_v29 = vmul.f32 %v98_v27, %v86_v25 }
  0x90   :  { %v110_v35 = vperm.slane %v99_v29, %v109_v28  ;;  %v367_v29 = vsub.f32 %v872_v1, %v366_v16 }
  0x92   :  { %v368_v39 = vand.u32 4294901760, %v367_v29 }
  0x95   :  { %v91_v30 = vpop.xlane.xlu0 %90 }
  0x96   :  { %v100_v31 = vmul.f32 %v98_v27, %v91_v30  ;;  %v372_v30 = vand.u32 4294901760, %v899_v24 }
  0x98   :  { %v111_v42 = vperm.slane %v100_v31, %v109_v28  ;;  %v356_v28 = vand.u32 4294901760, %v355_v13  ;;  %v373_v34 = vsub.f32 %v899_v24, %v372_v30  ;;  %v267_v13 = vld [vmem:[#allocation7] sm:$0xff] }
  0x9a   :  { %v113_v51 = vsel %vm112_vm2, %v111_v42, %v110_v35  ;;  %v384_v35 = vand.u32 4294901760, %v906_v26  ;;  %357 = vmatpush.msra.mxu3 %v356_v28  ;;  %v317_v28 = vand.u32 4294901760, %v267_v13 }
  0x9b   :  { %v115_v55 = vsel %vm114_vm3, %v113_v51, 0 }
  0x9c   :  { %v857_v59 = vand.u32 4294901760, %v115_v55  ;;  %363 = vmatpush.msra.mxu3 %v362_v33  ;;  %v385_v41 = vsub.f32 %v906_v26, %v384_v35 }
  0x9e   :  { %168 = vmatmul.f32.vlgmr.msra.gmra.mxu1 %v857_v59  ;;  %v138_v2 = vsub.f32 %v115_v55, %v857_v59  ;;  %369 = vmatpush.msra.mxu3 %v368_v39  ;;  %v386_v51 = vand.u32 4294901760, %v385_v41  ;;  %v392_v55 = vand.u32 4294901760, %v391_v46  ;;  %v419_v39 = vsub.f32 %v267_v13, %v317_v28 }
  0x9f   :  { %260 = vmatpush.msra.mxu1 %v806_v14  ;;  %v889_v14 = vand.u32 4294901760, %v274_v5 }
  0xa0   :  { %v139_v11 = vand.u32 4294901760, %v138_v2  ;;  %v420_v41 = vand.u32 4294901760, %v419_v39 }
  0xa1   :  { %v902_v25 = vsub.f32 %v274_v5, %v889_v14  ;;  %304 = vmatpush.msra.mxu2 %v889_v14 }
  0xa2   :  { %v140_v20 = vsub.f32 %v138_v2, %v139_v11  ;;  %v421_v46 = vsub.f32 %v419_v39, %v420_v41 }
  0xa3   :  { %v378_v31 = vand.u32 4294901760, %v902_v25  ;;  %306 = vmatpush.msra.mxu2 %v891_v19 }
  0xa4   :  { %v141_v27 = vand.u32 4294901760, %v140_v20 }
  0xa5   :  { %v379_v40 = vsub.f32 %v902_v25, %v378_v31  ;;  %308 = vmatpush.msra.mxu2 %v896_v22 }
  0xa6   :  { %142 = vmatmul.f32.vlgmr.msra.gmra.mxu0 %v141_v27  ;;  %216 = vmatmul.f32.vlgmr.msrb.gmra.mxu1 %v139_v11  ;;  %v407_v11 = vsub.f32 %v269_v4, %v972_v7  ;;  %v413_v27 = vsub.f32 %v268_v8, %v315_v12 }
  0xa7   :  { %238 = vmatpush.msra.mxu0 %v163_v17  ;;  %484 = vmatpush.msrb.mxu1 %v818_v36  ;;  %v374_v17 = vand.u32 4294901760, %v373_v34  ;;  %v380_v42 = vand.u32 4294901760, %v379_v40 }
  0xa8   :  { %v408_v23 = vand.u32 4294901760, %v407_v11  ;;  %v414_v34 = vand.u32 4294901760, %v413_v27 }
  0xa9   :  { %486 = vmatpush.msrb.mxu1 %v820_v37  ;;  %375 = vmatpush.msra.mxu3 %v374_v17 }
  0xaa   :  { %v409_v33 = vsub.f32 %v407_v11, %v408_v23  ;;  %v415_v17 = vsub.f32 %v413_v27, %v414_v34 }
  0xab   :  { %488 = vmatpush.msrb.mxu1 %v822_v38  ;;  %381 = vmatpush.msra.mxu3 %v380_v42 }
  0xac   :  { %v410_v40 = vand.u32 4294901760, %v409_v33  ;;  %v416_v42 = vand.u32 4294901760, %v415_v17 }
  0xad   :  { %490 = vmatpush.msrb.mxu1 %v824_v43  ;;  %387 = vmatpush.msra.mxu3 %v386_v51  ;;  %v422_v51 = vand.u32 4294901760, %v421_v46 }
  0xae   :  { %192 = vmatmul.f32.vlgmr.msrb.gmra.mxu0 %v138_v2  ;;  %262 = vmatmul.f32.vlgmr.msra.gmra.mxu1 %v857_v59  ;;  %v966_v2 = vand.u32 4294901760, %v270_v63 }
  0xaf   :  { %431 = vmatpush.msrb.mxu0 %v831_v47  ;;  %492 = vmatpush.msrb.mxu1 %v826_v44 }
  0xb0   :  { %393 = vmatpush.msra.mxu3 %v392_v55  ;;  %v401_v6 = vsub.f32 %v270_v63, %v966_v2 }
  0xb1   :  { %434 = vmatpush.msrb.mxu0 %v834_v48  ;;  %494 = vmatpush.msrb.mxu1 %v828_v45 }
  0xb2   :  { %v402_v10 = vand.u32 4294901760, %v401_v6 }
  0xb3   :  { %437 = vmatpush.msrb.mxu0 %v837_v49  ;;  %496 = vmatpush.msrb.mxu1 %v840_v50 }
  0xb4   :  { %v403_v21 = vsub.f32 %v401_v6, %v402_v10 }
  0xb5   :  { %440 = vmatpush.msrb.mxu0 %v844_v52  ;;  %498 = vmatpush.msrb.mxu1 %v886_v18 }
  0xb6   :  { %240 = vmatmul.f32.vlgmr.msra.gmra.mxu0 %v857_v59  ;;  %v271_v59 = vld [vmem:[#allocation7 + $0x20] sm:$0xff]  ;;  %v404_v29 = vand.u32 4294901760, %v403_v21 }
  0xb7   :  { %443 = vmatpush.msrb.mxu0 %v847_v53  ;;  %500 = vmatpush.msrb.mxu1 %v889_v14  ;;  %v961_v62 = vand.u32 4294901760, %v271_v59 }
  0xb9   :  { %446 = vmatpush.msrb.mxu0 %v850_v54  ;;  %502 = vmatpush.msrb.mxu1 %v891_v19  ;;  %v964_v0 = vsub.f32 %v271_v59, %v961_v62 }
  0xba   :  { %310 = vmatpush.msra.mxu2 %v961_v62 }
  0xbb   :  { %449 = vmatpush.msrb.mxu0 %v872_v1  ;;  %504 = vmatpush.msrb.mxu1 %v896_v22  ;;  %v396_v5 = vand.u32 4294901760, %v964_v0 }
  0xbc   :  { %312 = vmatpush.msra.mxu2 %v966_v2 }
  0xbd   :  { %452 = vmatpush.msrb.mxu0 %v899_v24  ;;  %506 = vmatpush.msrb.mxu1 %v961_v62  ;;  %v397_v9 = vsub.f32 %v964_v0, %v396_v5 }
  0xbe   :  { %314 = vmatpush.msra.mxu2 %v972_v7 }
  0xbf   :  { %455 = vmatpush.msrb.mxu0 %v902_v25  ;;  %508 = vmatpush.msrb.mxu1 %v966_v2  ;;  %v398_v20 = vand.u32 4294901760, %v397_v9 }
  0xc0   :  { %316 = vmatpush.msra.mxu2 %v315_v12 }
  0xc1   :  { %458 = vmatpush.msrb.mxu0 %v906_v26  ;;  %510 = vmatpush.msrb.mxu1 %v972_v7 }
  0xc2   :  { %399 = vmatpush.msra.mxu3 %v398_v20  ;;  %318 = vmatpush.msra.mxu2 %v317_v28 }
  0xc3   :  { %461 = vmatpush.msrb.mxu0 %v915_v32  ;;  %512 = vmatpush.msrb.mxu1 %v315_v12 }
  0xc4   :  { %405 = vmatpush.msra.mxu3 %v404_v29  ;;  %525 = vmatpush.msrb.mxu2 %v330_v56 }
  0xc5   :  { %464 = vmatpush.msrb.mxu0 %v964_v0  ;;  %514 = vmatpush.msrb.mxu1 %v317_v28 }
  0xc6   :  { %411 = vmatpush.msra.mxu3 %v410_v40  ;;  %529 = vmatpush.msrb.mxu2 %v336_v57 }
  0xc7   :  { %467 = vmatpush.msrb.mxu0 %v401_v6 }
  0xc8   :  { %417 = vmatpush.msra.mxu3 %v416_v42  ;;  %533 = vmatpush.msrb.mxu2 %v342_v58 }
  0xc9   :  { %470 = vmatpush.msrb.mxu0 %v407_v11 }
  0xca   :  { %537 = vmatpush.msrb.mxu2 %v348_v60  ;;  %423 = vmatpush.msra.mxu3 %v422_v51 }
  0xcb   :  { %473 = vmatpush.msrb.mxu0 %v413_v27 }
  0xcc   :  { %592 = vmatpush.msrb.mxu3 %v818_v36  ;;  %541 = vmatpush.msrb.mxu2 %v354_v61 }
  0xcd   :  { %476 = vmatpush.msrb.mxu0 %v419_v39 }
  0xce   :  { %594 = vmatpush.msrb.mxu3 %v820_v37  ;;  %545 = vmatpush.msrb.mxu2 %v360_v3  ;;  %v655_v3 = vld [vmem:[%s1030_s4] ss:$0 sm:$0xff] }
  0xd0   :  { %596 = vmatpush.msrb.mxu3 %v822_v38  ;;  %549 = vmatpush.msrb.mxu2 %v366_v16  ;;  %v654_v38 = vld [vmem:[%s1028_s2] ss:$0 sm:$0xff] }
  0xd2   :  { %598 = vmatpush.msrb.mxu3 %v824_v43  ;;  %553 = vmatpush.msrb.mxu2 %v372_v30 }
  0xd4   :  { %600 = vmatpush.msrb.mxu3 %v826_v44  ;;  %557 = vmatpush.msrb.mxu2 %v378_v31 }
  0xd6   :  { %602 = vmatpush.msrb.mxu3 %v828_v45  ;;  %561 = vmatpush.msrb.mxu2 %v384_v35 }
  0xd8   :  { %604 = vmatpush.msrb.mxu3 %v840_v50  ;;  %565 = vmatpush.msrb.mxu2 %v390_v15 }
  0xda   :  { %606 = vmatpush.msrb.mxu3 %v886_v18  ;;  %569 = vmatpush.msrb.mxu2 %v396_v5 }
  0xdc   :  { %608 = vmatpush.msrb.mxu3 %v889_v14  ;;  %573 = vmatpush.msrb.mxu2 %v402_v10 }
  0xde   :  { %610 = vmatpush.msrb.mxu3 %v891_v19  ;;  %577 = vmatpush.msrb.mxu2 %v408_v23 }
  0xe0   :  { %612 = vmatpush.msrb.mxu3 %v896_v22  ;;  %581 = vmatpush.msrb.mxu2 %v414_v34 }
  0xe2   :  { %614 = vmatpush.msrb.mxu3 %v961_v62  ;;  %585 = vmatpush.msrb.mxu2 %v420_v41 }
  0xe4   :  { %616 = vmatpush.msrb.mxu3 %v966_v2 }
  0xe6   :  { %618 = vmatpush.msrb.mxu3 %v972_v7 }
  0xe8   :  { %620 = vmatpush.msrb.mxu3 %v315_v12 }
  0xea   :  { %622 = vmatpush.msrb.mxu3 %v317_v28 }
 0x11b   :  { %v169_v36 = vpop.f32.mrf.mxu1 }
 0x123   :  { %v143_v37 = vpop.f32.mrf.mxu0  ;;  %v217_v44 = vpop.f32.mrf.mxu1 }
 0x124   :  { %v144_v43 = vadd.f32 %v654_v38, %v143_v37 }
 0x126   :  { %v170_v47 = vadd.f32 %v169_v36, %v144_v43 }
 0x12b   :  { %v193_v45 = vpop.f32.mrf.mxu0  ;;  %v263_v53 = vpop.f32.mrf.mxu1 }
 0x12c   :  { %v194_v48 = vadd.f32 %v193_v45, %v170_v47 }
 0x12e   :  { %v218_v49 = vadd.f32 %v217_v44, %v194_v48 }
 0x133   :  { %v241_v50 = vpop.f32.mrf.mxu0 }
 0x134   :  { %v242_v52 = vadd.f32 %v241_v50, %v218_v49 }
 0x136   :  { %v264_v54 = vadd.f32 %v263_v53, %v242_v52 }
 0x138   :  { %v266_v56 = vmax.f32 %v264_v54, 0.0 }
 0x13a   :  { %v319_v57 = vand.u32 4294901760, %v266_v56 }
 0x13c   :  { %v320_v58 = vsub.f32 %v266_v56, %v319_v57  ;;  %425 = vmatmul.f32.vlgmr.msra.gmra.mxu3 %v319_v57 }
 0x13e   :  { %479 = vmatmul.f32.vlgmr.msrb.gmra.mxu0 %v320_v58  ;;  %v321_v60 = vand.u32 4294901760, %v320_v58 }
 0x140   :  { %518 = vmatmul.f32.vlgmr.msrb.gmra.mxu1 %v321_v60  ;;  %v322_v61 = vsub.f32 %v320_v58, %v321_v60 }
 0x142   :  { %v323_v1 = vand.u32 4294901760, %v322_v61 }
 0x144   :  { %324 = vmatmul.f32.vlgmr.msra.gmra.mxu2 %v323_v1  ;;  %624 = vmatmul.f32.vlgmr.msrb.gmra.mxu3 %v319_v57 }
 0x14c   :  { %587 = vmatmul.f32.vlgmr.msrb.gmra.mxu2 %v319_v57 }
 0x1bb   :  { %v480_v22 = vpop.f32.mrf.mxu0 }
 0x1bd   :  { %v519_v25 = vpop.f32.mrf.mxu1 }
 0x1bf   :  { %v426_v16 = vpop.f32.mrf.mxu3 }
 0x1c7   :  { %v325_v18 = vpop.f32.mrf.mxu2  ;;  %v625_v32 = vpop.f32.mrf.mxu3 }
 0x1c8   :  { %v326_v14 = vadd.f32 %v655_v3, %v325_v18 }
 0x1ca   :  { %v427_v19 = vadd.f32 %v426_v16, %v326_v14 }
 0x1cc   :  { %v481_v24 = vadd.f32 %v480_v22, %v427_v19 }
 0x1ce   :  { %v520_v26 = vadd.f32 %v519_v25, %v481_v24 }
 0x1cf   :  { %v588_v30 = vpop.f32.mrf.mxu2 }
 0x1d0   :  { %v589_v31 = vadd.f32 %v588_v30, %v520_v26 }
 0x1d2   :  { %v626_v35 = vadd.f32 %v625_v32, %v589_v31 }
 0x1d4   :  { %628 = vst [vmem:[#allocation8] sm:$0x3] %v626_v35 }
 0x1d5   :  { %639 = dma.vmem_to_hbm [thread:$0]  %s635_s11, 32, %s637_s14, [#allocation4]  }
 0x1d6   :  { %758 = dma.done.wait [#allocation4], 32  }
 0x1d7   :  { %759 = vsyncadd [#allocation4], 4294967264 }
 0x1d8   :  { %644 = vsyncpa [#allocation3], 1 }
 0x1d9   :  { %645 = vsyncpa [#allocation6], 1 }
 0x1da   :  { %646 = vsyncpa [#allocation4], 1 }

</bundles_post_ra>
